<compile_context>
chip_gen: v5e
topology: v5e:2x2
jax: 0.10.0
libtpu: 0.0.40
codegen_flags: <defaults>
</compile_context>

<pallas_src>
import functools

import jax
import jax.numpy as jnp
from jax.experimental import pallas as pl
from jax.experimental.pallas import tpu as pltpu


# ---------------------------------------------------------------------------
# shared conv-tile compute
# ---------------------------------------------------------------------------
def _conv_tile_f32(x_ref, w_ref, tile_idx, *, K, C_in, TL, stride, dilation,
                   fuse_taps):
    """Conv over one output-lane tile -> (C_out, TL) f32 accumulator.

    x_ref: (S, C_in, Lm) stride-phase-split, pre-padded input (resident per sample).
    w_ref: (C_out, K*C_in) im2col weights, tap-major.
    Tap k of output position j reads phase (k*dil) % S at m = j + (k*dil)//S, so every
    tap is a contiguous lane slice -> no lane-strided gathers in the hot loop.
    """
    start = tile_idx * TL
    if not isinstance(start, int) and TL % 128 == 0:
        start = pl.multiple_of(start, 128)

    w = w_ref[...]
    taps = []
    for k in range(K):
        ph = (k * dilation) % stride
        off = (k * dilation) // stride
        taps.append(x_ref[ph, :, pl.ds(start + off, TL)])          # (C_in, TL)

    if fuse_taps:
        # Small C_in: keep the full K*C_in contraction in one MXU call.
        slab = jnp.concatenate(taps, axis=0)                       # (K*C_in, TL)
        return jnp.dot(w, slab, preferred_element_type=jnp.float32)

    # Large C_in: K unrolled accumulating matmuls, no slab materialization.
    acc = jnp.dot(w[:, :C_in], taps[0], preferred_element_type=jnp.float32)
    for k in range(1, K):
        acc = acc + jnp.dot(w[:, k * C_in:(k + 1) * C_in], taps[k],
                            preferred_element_type=jnp.float32)
    return acc


# ---------------------------------------------------------------------------
# pass 1: BN batch statistics only (no conv output written to HBM)
# ---------------------------------------------------------------------------
def _conv_stats_kernel(x_ref, w_ref, st_ref, *, K, C_in, TL, L_out, num_tiles,
                       stride, dilation, fuse_taps):
    t = pl.program_id(1)

    @pl.when(t == 0)
    def _():
        st_ref[...] = jnp.zeros_like(st_ref)

    tile = 0 if num_tiles == 1 else t
    acc = _conv_tile_f32(x_ref, w_ref, tile, K=K, C_in=C_in, TL=TL,
                         stride=stride, dilation=dilation, fuse_taps=fuse_taps)

    if num_tiles * TL > L_out:
        # Mask lanes past L_out (partial last tile) so they don't pollute BN stats.
        lane = jax.lax.broadcasted_iota(jnp.int32, (1, TL), 1)
        acc = jnp.where(t * TL + lane < L_out, acc, 0.0)

    s1 = jnp.sum(acc, axis=-1, keepdims=True)                      # (C_out, 1)
    s2 = jnp.sum(acc * acc, axis=-1, keepdims=True)                # (C_out, 1)
    # Resident accumulator across the "arbitrary" L-tile axis: one HBM store per sample.
    st_ref[...] += jnp.concatenate([s1, s2], axis=-1)              # (C_out, 2)


# ---------------------------------------------------------------------------
# pass 2: conv recomputed + fused BN affine + ReLU
# ---------------------------------------------------------------------------
def _conv_bn_relu_kernel(x_ref, w_ref, scale_ref, shift_ref, o_ref, *, K, C_in,
                         TL, num_tiles, stride, dilation, fuse_taps):
    t = pl.program_id(1)
    tile = 0 if num_tiles == 1 else t
    acc = _conv_tile_f32(x_ref, w_ref, tile, K=K, C_in=C_in, TL=TL,
                         stride=stride, dilation=dilation, fuse_taps=fuse_taps)
    o_ref[...] = jnp.maximum(acc * scale_ref[...] + shift_ref[...],
                             0.0).astype(o_ref.dtype)


# ---------------------------------------------------------------------------
# VMEM-aware tiling
# ---------------------------------------------------------------------------
def _vmem_capacity_bytes():
    try:
        return int(pltpu.get_tpu_info().vmem_capacity_bytes)
    except Exception:
        return 64 * 1024 * 1024        # conservative fallback = v7x physical VMEM


def _pick_tile_l(L_out, C_out, C_in, K, itemsize, x_sample_bytes, w_bytes,
                 vmem_limit):
    """Largest lane-dense L_out tile that keeps the per-step footprint in budget."""
    reserve = 4 << 20
    avail = vmem_limit - 2 * x_sample_bytes - 2 * w_bytes - reserve
    # per output lane: f32 out tile (double-buffered) + f32 acc + tap slices / slab
    per_lane = 12 * C_out + 2 * itemsize * K * C_in + 8
    cap = max(128, avail // per_lane) if avail > 0 else 128
    if L_out <= min(cap, 4096):
        return L_out                      # single full-extent tile (no 128 constraint)
    tl = int(min(cap, 2048))              # measured: 512-2048 already near HBM roofline
    return max(128, (tl // 128) * 128)


# ---------------------------------------------------------------------------
# wrapper
# ---------------------------------------------------------------------------
def conbr_block_forward(x, w, gamma, beta, *, stride, dilation, padding=2,
                        eps=1e-5, conv_bias=None, compute_dtype=jnp.float32,
                        tile_l=None):
    """Forward of conbr_block: Conv1d(pad=2, bias) -> BatchNorm1d(train) -> ReLU.

    x: (N, C_in, L), w: (C_out, C_in, K), gamma/beta: (C_out,).
    conv_bias is accepted for API parity but dropped: train-mode BN subtracts the
    per-channel mean right after the conv, so the bias cancels exactly.
    compute_dtype=jnp.bfloat16 halves x/w HBM+VMEM traffic (MXU-native); default stays
    f32 for bit-tight parity with the PyTorch reference.
    """
    del conv_bias  # mathematically cancelled by BN mean subtraction
    N, C_in, L = (int(s) for s in x.shape)
    C_out, _, K = (int(s) for s in w.shape)
    S = int(stride)
    d = int(dilation)
    L_out = (L + 2 * padding - d * (K - 1) - 1) // S + 1
    assert L_out > 0

    itemsize = jnp.dtype(compute_dtype).itemsize
    phys_vmem = _vmem_capacity_bytes()
    vmem_limit = int(max(32 << 20, min(int(phys_vmem * 0.7), 96 << 20)))

    halo_m = ((K - 1) * d) // S
    if tile_l is None:
        x_sample_bytes = S * C_in * (L_out + 2048 + halo_m) * itemsize
        w_bytes = C_out * K * C_in * itemsize
        tile_l = _pick_tile_l(L_out, C_out, C_in, K, itemsize,
                              x_sample_bytes, w_bytes, vmem_limit)
    TL = int(tile_l)
    assert TL == L_out or TL % 128 == 0, "tile_l must equal L_out or be a multiple of 128"
    T = pl.cdiv(L_out, TL)

    # TODO(synk): for extreme L where one sample's (S, C_in, Lm) no longer fits VMEM,
    # a halo-windowed manual-DMA input path (memory_space=pl.ANY) is still needed.

    # --- wrapper-side layout plumbing (~1x input bytes): pad + stride-phase split ---
    Lm = T * TL + halo_m
    flat_len = S * Lm
    right_pad = max(0, flat_len - (L + padding))
    xp = jnp.pad(x, ((0, 0), (0, 0), (padding, right_pad)))[:, :, :flat_len]
    x_ph = (xp.reshape(N, C_in, Lm, S)
              .transpose(0, 3, 1, 2)
              .astype(compute_dtype))                              # (N, S, C_in, Lm)

    # im2col weights, tap-major: w2[:, k*C_in:(k+1)*C_in] is tap k.
    w2 = jnp.transpose(w, (0, 2, 1)).reshape(C_out, K * C_in).astype(compute_dtype)

    fuse_taps = (K * C_in) <= 256     # small contraction -> one fused MXU call

    common = dict(K=K, C_in=C_in, TL=TL, num_tiles=int(T), stride=S, dilation=d,
                  fuse_taps=fuse_taps)

    x_spec = pl.BlockSpec((None, S, C_in, Lm), lambda n, t: (n, 0, 0, 0))
    w_spec = pl.BlockSpec((C_out, K * C_in), lambda n, t: (0, 0))

    # ---- pass 1: statistics only (no f32 y intermediate round-trips HBM) ----
    stats = pl.pallas_call(
        functools.partial(_conv_stats_kernel, L_out=L_out, **common),
        out_shape=jax.ShapeDtypeStruct((N, C_out, 2), jnp.float32),
        grid=(N, T),
        in_specs=[x_spec, w_spec],
        out_specs=pl.BlockSpec((None, C_out, 2), lambda n, t: (n, 0, 0)),
        compiler_params=pltpu.CompilerParams(
            dimension_semantics=("parallel", "arbitrary"),
            vmem_limit_bytes=vmem_limit),
    )(x_ph, w2)

    # Fold train-mode batch stats (biased variance) into per-channel scale/shift.
    # NOTE: single-pass E[x^2]-E[x]^2 in f32; fine at these scales, Welford otherwise.
    count = float(N * L_out)
    mean = jnp.sum(stats[:, :, 0], axis=0) / count
    ex2 = jnp.sum(stats[:, :, 1], axis=0) / count
    var = jnp.maximum(ex2 - mean * mean, 0.0)
    scale = gamma.astype(jnp.float32) * jax.lax.rsqrt(var + eps)
    shift = beta.astype(jnp.float32) - mean * scale
    scale2 = scale.reshape(C_out, 1)
    shift2 = shift.reshape(C_out, 1)

    # ---- pass 2: conv recomputed, fused with BN affine + ReLU ----
    out = pl.pallas_call(
        functools.partial(_conv_bn_relu_kernel, **common),
        out_shape=jax.ShapeDtypeStruct((N, C_out, L_out), jnp.float32),
        grid=(N, T),
        in_specs=[x_spec, w_spec,
                  pl.BlockSpec((C_out, 1), lambda n, t: (0, 0)),
                  pl.BlockSpec((C_out, 1), lambda n, t: (0, 0))],
        out_specs=pl.BlockSpec((None, C_out, TL), lambda n, t: (n, 0, t)),
        compiler_params=pltpu.CompilerParams(
            dimension_semantics=("parallel", "parallel"),
            vmem_limit_bytes=vmem_limit),
    )(x_ph, w2, scale2, shift2)
    return out

# TODO(synk): BatchNorm1d running_mean / running_var buffer updates (training-mode
# side effect of the nn.Module) are not emitted; only the forward activation is.


if __name__ == "__main__":
    key = jax.random.PRNGKey(0)
    kx, kw, kb, kg, kbe = jax.random.split(key, 5)

    def ref_forward(x, w, b, gamma, beta, stride, dilation, padding=2, eps=1e-5):
        y = jax.lax.conv_general_dilated(
            x, w, window_strides=(stride,), padding=[(padding, padding)],
            rhs_dilation=(dilation,), dimension_numbers=("NCH", "OIH", "NCH"),
            precision=jax.lax.Precision.HIGHEST) + b.reshape(1, -1, 1)
        mean = y.mean(axis=(0, 2), keepdims=True)
        var = ((y - mean) ** 2).mean(axis=(0, 2), keepdims=True)
        yn = (y - mean) * jax.lax.rsqrt(var + eps)
        return jnp.maximum(yn * gamma.reshape(1, -1, 1) + beta.reshape(1, -1, 1), 0.0)

    # (N, C_in, C_out, L, K, stride, dilation, tile_l)
    configs = [
        (2, 4, 8, 16, 5, 1, 1, None),    # plain conv
        (2, 4, 8, 16, 5, 2, 1, None),    # strided conv (phase-split path)
        (2, 4, 8, 16, 5, 1, 2, None),    # dilated conv
        (2, 4, 8, 300, 5, 1, 1, 128),    # multi L-tile + masked partial last tile
    ]
    padding = 2
    for (N, C_in, C_out, L, K, stride, dilation, tile_l) in configs:
        x = jax.random.normal(kx, (N, C_in, L), dtype=jnp.float32)
        w = jax.random.normal(kw, (C_out, C_in, K), dtype=jnp.float32) * 0.1
        b = jax.random.normal(kb, (C_out,), dtype=jnp.float32) * 0.1
        gamma = 1.0 + 0.1 * jax.random.normal(kg, (C_out,), dtype=jnp.float32)
        beta = 0.1 * jax.random.normal(kbe, (C_out,), dtype=jnp.float32)

        out = conbr_block_forward(x, w, gamma, beta, stride=stride,
                                  dilation=dilation, padding=padding,
                                  conv_bias=b, tile_l=tile_l)
        out = jax.block_until_ready(out)

        L_out = (L + 2 * padding - dilation * (K - 1) - 1) // stride + 1
        assert out.shape == (N, C_out, L_out), (out.shape, (N, C_out, L_out))
        assert bool(jnp.all(jnp.isfinite(out)))

        ref = ref_forward(x, w, b, gamma, beta, stride, dilation, padding)
        assert bool(jnp.allclose(out, ref, atol=1e-2, rtol=1e-2)), (
            f"mismatch for config stride={stride} dilation={dilation} L={L}")

    print("KERNEL_OK")
</pallas_src>

<mosaic_0001>
module attributes {stable_mosaic.version = 11 : i64} {
  func.func @_conv_stats_kernel(%arg0: i32, %arg1: i32, %arg2: memref<1x1x4x20xf32, #tpu.memory_space<vmem>>, %arg3: memref<8x20xf32, #tpu.memory_space<vmem>>, %arg4: memref<1x8x2xf32, #tpu.memory_space<vmem>>) attributes {dimension_semantics = [#tpu.dimension_semantics<parallel>, #tpu.dimension_semantics<arbitrary>], iteration_bounds = array<i64: 2, 1>, scalar_prefetch = 0 : i64, scratch_operands = 0 : i64, tpu.core_type = #tpu.core_type<tc>, window_params = [{transform_indices = @transform_0, window_bounds = array<i64: 1, 1, 4, 20>}, {pipeline_mode = #tpu.pipeline_mode<synchronous>, transform_indices = @transform_1, window_bounds = array<i64: 8, 20>}, {transform_indices = @transform_2, window_bounds = array<i64: 1, 8, 2>}]} {
    %c0_i32 = arith.constant 0 : i32
    %0 = arith.cmpi eq, %arg1, %c0_i32 : i32
    %1 = arith.extui %0 : i1 to i32
    %c0_i32_0 = arith.constant 0 : i32
    %2 = arith.cmpi ne, %1, %c0_i32_0 : i32
    scf.if %2 {
      %cst_26 = arith.constant 0.000000e+00 : f32
      %28 = vector.broadcast %cst_26 : f32 to vector<8x2xf32>
      %c0_27 = arith.constant 0 : index
      %c0_28 = arith.constant 0 : index
      %c0_29 = arith.constant 0 : index
      %29 = vector.load %arg4[%c0_27, %c0_28, %c0_29] : memref<1x8x2xf32, #tpu.memory_space<vmem>>, vector<1x8x2xf32>
      %30 = vector.shape_cast %29 : vector<1x8x2xf32> to vector<8x2xf32>
      %31 = vector.shape_cast %28 : vector<8x2xf32> to vector<1x8x2xf32>
      tpu.vector_store %arg4[%c0_27, %c0_28, %c0_29], %31 {strides = array<i32>} : memref<1x8x2xf32, #tpu.memory_space<vmem>>, vector<1x8x2xf32>,
    } else {
    }
    %c0 = arith.constant 0 : index
    %c0_1 = arith.constant 0 : index
    %3 = vector.load %arg3[%c0, %c0_1] : memref<8x20xf32, #tpu.memory_space<vmem>>, vector<8x20xf32>
    %c0_2 = arith.constant 0 : index
    %c0_3 = arith.constant 0 : index
    %c0_4 = arith.constant 0 : index
    %c0_5 = arith.constant 0 : index
    %4 = vector.load %arg2[%c0_2, %c0_3, %c0_4, %c0_5] : memref<1x1x4x20xf32, #tpu.memory_space<vmem>>, vector<1x1x4x16xf32>
    %5 = vector.shape_cast %4 : vector<1x1x4x16xf32> to vector<4x16xf32>
    %c0_6 = arith.constant 0 : index
    %c0_7 = arith.constant 0 : index
    %c0_8 = arith.constant 0 : index
    %c1 = arith.constant 1 : index
    %6 = vector.load %arg2[%c0_6, %c0_7, %c0_8, %c1] : memref<1x1x4x20xf32, #tpu.memory_space<vmem>>, vector<1x1x4x16xf32>
    %7 = vector.shape_cast %6 : vector<1x1x4x16xf32> to vector<4x16xf32>
    %c0_9 = arith.constant 0 : index
    %c0_10 = arith.constant 0 : index
    %c0_11 = arith.constant 0 : index
    %c2 = arith.constant 2 : index
    %8 = vector.load %arg2[%c0_9, %c0_10, %c0_11, %c2] : memref<1x1x4x20xf32, #tpu.memory_space<vmem>>, vector<1x1x4x16xf32>
    %9 = vector.shape_cast %8 : vector<1x1x4x16xf32> to vector<4x16xf32>
    %c0_12 = arith.constant 0 : index
    %c0_13 = arith.constant 0 : index
    %c0_14 = arith.constant 0 : index
    %c3 = arith.constant 3 : index
    %10 = vector.load %arg2[%c0_12, %c0_13, %c0_14, %c3] : memref<1x1x4x20xf32, #tpu.memory_space<vmem>>, vector<1x1x4x16xf32>
    %11 = vector.shape_cast %10 : vector<1x1x4x16xf32> to vector<4x16xf32>
    %c0_15 = arith.constant 0 : index
    %c0_16 = arith.constant 0 : index
    %c0_17 = arith.constant 0 : index
    %c4 = arith.constant 4 : index
    %12 = vector.load %arg2[%c0_15, %c0_16, %c0_17, %c4] : memref<1x1x4x20xf32, #tpu.memory_space<vmem>>, vector<1x1x4x16xf32>
    %13 = vector.shape_cast %12 : vector<1x1x4x16xf32> to vector<4x16xf32>
    %14 = tpu.concatenate %5, %7, %9, %11, %13 in 0 : vector<4x16xf32>, vector<4x16xf32>, vector<4x16xf32>, vector<4x16xf32>, vector<4x16xf32> -> vector<20x16xf32>
    %cst = arith.constant dense<0.000000e+00> : vector<8x16xf32>
    %15 = tpu.matmul %3, %14, %cst {dimension_numbers = #tpu.dot_dimension_numbers<[1], [0], [0], [1], [0, 0, 1, 1], [], []>} : vector<8x20xf32>, vector<20x16xf32>, vector<8x16xf32> -> vector<8x16xf32>
    %cst_18 = arith.constant dense<0.000000e+00> : vector<8xf32>
    %16 = vector.multi_reduction <add>, %15, %cst_18 [1] : vector<8x16xf32> to vector<8xf32>
    %17 = vector.shape_cast %16 : vector<8xf32> to vector<8x1xf32>
    %18 = arith.mulf %15, %15 : vector<8x16xf32>
    %cst_19 = arith.constant dense<0.000000e+00> : vector<8xf32>
    %19 = vector.multi_reduction <add>, %18, %cst_19 [1] : vector<8x16xf32> to vector<8xf32>
    %20 = vector.shape_cast %19 : vector<8xf32> to vector<8x1xf32>
    %c0_20 = arith.constant 0 : index
    %c0_21 = arith.constant 0 : index
    %c0_22 = arith.constant 0 : index
    %21 = vector.load %arg4[%c0_20, %c0_21, %c0_22] : memref<1x8x2xf32, #tpu.memory_space<vmem>>, vector<1x8x2xf32>
    %22 = vector.shape_cast %21 : vector<1x8x2xf32> to vector<8x2xf32>
    %23 = tpu.concatenate %17, %20 in 1 : vector<8x1xf32>, vector<8x1xf32> -> vector<8x2xf32>
    %24 = arith.addf %22, %23 : vector<8x2xf32>
    %c0_23 = arith.constant 0 : index
    %c0_24 = arith.constant 0 : index
    %c0_25 = arith.constant 0 : index
    %25 = vector.load %arg4[%c0_23, %c0_24, %c0_25] : memref<1x8x2xf32, #tpu.memory_space<vmem>>, vector<1x8x2xf32>
    %26 = vector.shape_cast %25 : vector<1x8x2xf32> to vector<8x2xf32>
    %27 = vector.shape_cast %24 : vector<8x2xf32> to vector<1x8x2xf32>
    tpu.vector_store %arg4[%c0_23, %c0_24, %c0_25], %27 {strides = array<i32>} : memref<1x8x2xf32, #tpu.memory_space<vmem>>, vector<1x8x2xf32>,
    return
  }
  func.func @transform_0(%arg0: i32, %arg1: i32) -> (i32, i32, i32, i32) {
    %c0_i32 = arith.constant 0 : i32
    %c0_i32_0 = arith.constant 0 : i32
    %c0_i32_1 = arith.constant 0 : i32
    %c0_i32_2 = arith.constant 0 : i32
    return %arg0, %c0_i32, %c0_i32_0, %c0_i32_1 : i32, i32, i32, i32
  }
  func.func @transform_1(%arg0: i32, %arg1: i32) -> (i32, i32) {
    %c0_i32 = arith.constant 0 : i32
    %c0_i32_0 = arith.constant 0 : i32
    %c0_i32_1 = arith.constant 0 : i32
    return %c0_i32, %c0_i32_0 : i32, i32
  }
  func.func @transform_2(%arg0: i32, %arg1: i32) -> (i32, i32, i32) {
    %c0_i32 = arith.constant 0 : i32
    %c0_i32_0 = arith.constant 0 : i32
    %c0_i32_1 = arith.constant 0 : i32
    return %arg0, %c0_i32, %c0_i32_0 : i32, i32, i32
  }
}

</mosaic_0001>

<bundles_post_ra>
// kernel: tpu_custom_call.1
= control target key start
LH: loop header
LB: loop body
LE: loop exit
PB: predicated region body
PF: predicated region fallthrough
CT: control target
= control target key end

     0   :  { %7 = vsyncpa [#allocation3], 0  ;;  %s676_s0 = inlined_call_operand.hbm [shape: f32[2,1,4,20], index: 0, kind: input, shape index: {}]   ;;  %s677_s1 = inlined_call_operand.hbm [shape: f32[8,20], index: 1, kind: input, shape index: {}]   ;;  %s678_s2 = inlined_call_operand.vmem [shape: f32[2,8,2], index: 2, kind: output, shape index: {}]  }
   0x1   :  { %9 = vsyncpa [#allocation3 + $0x1], 0 }
   0x2   :  { %10 = vsyncpa [#allocation5], 0  ;;  %s558_s9 = smov 0   ;;  %s560_s10 = smov 0  }
   0x3   :  { %s562_s11 = smov 0   ;;  %s564_s12 = smov 0  }
   0x4   :  { %s566_s13 = smov 0   ;;  %s568_s14 = smov 0  }
   0x5 LB: > { %s335_s15 = sadd.s32 4294967295, %s535_s14   ;;  %p48_p0 = scmp.ne.s32.totalorder %s519_s10, %s515_s9  ;;  %s535_s14 = sphi %s568_s14, %s16_s14   ;;  %s531_s13 = sphi %s566_s13, %s687_s13   ;;  %s527_s12 = sphi %s564_s12, %s686_s12   ;;  %s523_s11 = sphi %s562_s11, %s685_s11   ;;  %s519_s10 = sphi %s560_s10, %s684_s10   ;;  %s515_s9 = sphi %s558_s9, %s683_s9  }
   0x6   : > { %p588_p1 = scmp.eq.s32.totalorder %s335_s15, 0  ;;  %p337_p2 = scmp.ge.s32.totalorder %s535_s14, 1 }
   0x7   : > { %p106_p3 = scmp.lt.s32.totalorder %s535_s14, 3  ;;  %s118_s20 = sshll.u32 %s677_s1, 4  ;;  %s119_s20 = int_to_ptr.hbm [resolvable:$true] %s118_s20 }
   0x8   : > { %p596_p4 = por %p588_p1, %p48_p0  ;;  %s537_s22 = smov [#allocation4]  }
   0x9   : > { %p603_p5 = pnand %p337_p2, %p106_p3  ;;  %s120_s23 = sshll.u32 %s537_s22, 4  ;;  %s121_s23 = int_to_ptr.vmem [resolvable:$true] %s120_s23 }
   0xa   : > { %s28_s24 = sadd.s32 1, %s531_s13  ;;  %p42_p9 = scmp.ne.s32.totalorder %s523_s11, %s519_s10 }
   0xb   : > { %p356_p6 = pneg %p603_p5  ;;  %p30_p8 = scmp.ge.s32.totalorder %s28_s24, 2 }
   0xc   : > { %p43_p10 = scmp.eq.s32.totalorder %s535_s14, 0  ;;  %s35_s25 = sadd.s32 1, %s523_s11 }
   0xd   : > { %p357_p7 = pnand %p356_p6, %p588_p1  ;;  %s689_s24 = smov (%p30_p8, %s28_s24), 0 }
   0xe   : > { %p618_p11 = por %p43_p10, %p42_p9  ;;  %s32_s27 = ssub.s32 %s531_s13, %s689_s24 }
   0xf   : > { %359 = dma.hbm_to_vmem [thread:$0]  (!%p357_p7), %s119_s20, 128, %s121_s23, [#allocation5]  }
  0x10   : > { %s131_s28 = sand.u32 1, %s523_s11   ;;  %p33_p12 = scmp.eq.s32.totalorder %s32_s27, 0 }
  0x11   : > { %p365_p13 = scmp.lt.s32.totalorder %s535_s14, 2  ;;  %s340_s29 = sshll.u32 %s131_s28, 2 }
  0x12   : > { %s341_s30 = sshll.u32 %s531_s13, 2  ;;  %s135_s8 = scalar_lea.vmem [#allocation2], %s340_s29 }
  0x13   : > { %s628_s3 = scalar_select %p33_p12, %s523_s11, %s35_s25  }
  0x14   : > { %s139_s6 = scalar_lea.hbm %s676_s0, %s341_s30  ;;  %s143_s9 = sshll.u32 %s135_s8, 4  ;;  %s144_s9 = int_to_ptr.vmem [resolvable:$true] %s143_s9 }
  0x15   : > { %s141_s7 = sshll.u32 %s139_s6, 4  ;;  %p361_p0 = pnand %p365_p13, %p618_p11  ;;  %s142_s7 = int_to_ptr.hbm [resolvable:$true] %s141_s7 }
  0x16   : > { %s132_s15 = scalar_lea.sflag [#allocation3], %s131_s28  ;;  %152 = sbr.rel (%p603_p5) target bundleno = 414 (0x19e), region = 28 }
  0x17   : > { %363 = dma.hbm_to_vmem [thread:$0]  (!%p361_p0), %s142_s7, 64, %s144_s9, %s132_s15  }
  0x18   : > { %s154_s18 = sand.u32 (!%p603_p5), 1, %s519_s10  }
  0x19   : > { %s343_s19 = sshll.u32 (!%p603_p5), %s154_s18, 2  ;;  %s155_s20 = scalar_lea.sflag (!%p603_p5), [#allocation3], %s154_s18 }
  0x1a   : > { %s158_s22 = scalar_lea.vmem (!%p603_p5), [#allocation2], %s343_s19 }
  0x1b   : > { %506 = dma.done.wait (%p596_p4), %s155_s20, 64  }
  0x1c   : > { %508 = vsyncadd (%p596_p4), %s155_s20, 4294967232 }
  0x1d   : > { %510 = dma.done.wait (%p588_p1), [#allocation5], 128  }
  0x1e   : > { %512 = vsyncadd (%p588_p1), [#allocation5], 4294967168  ;;  %p184_p2 = scmp.lt.s32.totalorder %s527_s12, 1  ;;  %vm192_vm0 = vcmask 15360   ;;  %v538_v0 = vmov 0.0   ;;  %s539_s17 = smov 124  }
  0x1f   : > { %v195_v1 = vld [vmem:[%s158_s22] sm:$0xf]  ;;  %s540_s16 = smov 125   ;;  %s541_s27 = smov 126   ;;  %vm209_vm1 = vcmask 1043456   ;;  %v194_v8 = vld [vmem:[#allocation4] sm:$0xff] }
  0x20   : > { %s691_s12 = smov (!%p184_p2, %s527_s12), 1  ;;  %207 = vrot.lane.b32.xlu0 %v195_v1, %s539_s17  ;;  %v197_v2 = vrot.slane %v195_v1, 4  ;;  %s542_s28 = smov 127   ;;  %vm212_vm2 = vcmask 162816   ;;  %vm238_vm3 = vcmask 130048   ;;  %vm247_vm4 = vcmask 7168  }
  0x21   : > { %s345_s21 = sshll.u32 %s691_s12, 3 }
  0x22   : > { %s651_s26 = scalar_lea.vmem %s678_s2, %s345_s21  ;;  %204 = vrot.lane.b32.xlu1 %v197_v2, %s540_s16 }
  0x23   : > { %193 = vst.msk [vmem:[%s651_s26] sm:$0xff] %vm192_vm0, %v538_v0 }
  0x28   : > { %201 = vrot.lane.b32.xlu0 %v195_v1, %s541_s27 }
  0x2a   : > { %198 = vrot.lane.b32.xlu1 %v197_v2, %s542_s28  ;;  %v246_v15 = vld [vmem:[%s651_s26] sm:$0xff] }
  0x92   : > { %v208_v3 = vpop.permute.xlu0 %207 }
  0x93   : > { %346 = vmatpush.msk.msra.mxu0 %vm209_vm1, %v208_v3 }
  0x94   : > { %v205_v4 = vpop.permute.xlu1 %204 }
  0x9a   : > { %v202_v5 = vpop.permute.xlu0 %201 }
  0x9b   : > { %v211_v6 = vsel %vm209_vm1, %v202_v5, %v205_v4 }
  0x9c   : > { %232 = vmatpush.msra.mxu0 %v211_v6  ;;  %v199_v7 = vpop.permute.xlu1 %198 }
  0x9d   : > { %v210_v9 = vsel %vm209_vm1, %v195_v1, %v199_v7 }
  0x9e   : > { %233 = vmatpush.msra.mxu0 %v210_v9 }
  0x9f   : > { %347 = vmatmul.msk.f32.vlgmr.msra.gmra.mxu0 %vm212_vm2, %v194_v8 }
 0x11c   : > { %v235_v10 = vpop.f32.mrf.mxu0 }
 0x11d   : > { %v239_v11 = vsel %vm238_vm3, %v235_v10, 0.0  ;;  %v242_v12 = vmul.f32 %v235_v10, %v235_v10 }
 0x11e   : > { %240 = vadd.xlane.f32.xlu2 %v239_v11 }
 0x11f   : > { %v243_v13 = vsel %vm238_vm3, %v242_v12, 0.0 }
 0x126   : > { %244 = vadd.xlane.f32.xlu2 %v243_v13 }
 0x191   : > { %v241_v14 = vpop.xlane.xlu2 %240 }
 0x199   : > { %v245_v16 = vpop.xlane.xlu2 %244 }
 0x19a   : > { %v248_v17 = vsel %vm247_vm4, %v241_v14, %v245_v16 }
 0x19b   : > { %v249_v18 = vadd.f32 %v248_v17, %v246_v15 }
 0x19d   : > { %251 = vst.msk [vmem:[%s651_s26] sm:$0xff] %vm192_vm0, %v249_v18 }
 0x19e PF: > { %s16_s14 = sadd.s32 1, %s535_s14   ;;  %s683_s9 = smov %s519_s10 }
 0x19f   : > { %p13_p1 = scmp.ge.s32.totalorder %s16_s14, 4   ;;  %s684_s10 = smov %s523_s11 }
 0x1a0   : > { %s685_s11 = smov %s628_s3  ;;  %s686_s12 = smov %s531_s13 }
 0x1a1   : > { %s687_s13 = smov %s689_s24  ;;  %15 = sbr.rel (!%p13_p1) target bundleno = 5 (0x5), region = 76 }
 0x1a6   :  { %271 = vsyncpa [#allocation3], 1 }
 0x1a7   :  { %273 = vsyncpa [#allocation3 + $0x1], 1 }
 0x1a8   :  { %274 = vsyncpa [#allocation5], 1 }

</bundles_post_ra>
